<compile_context>
chip_gen: v7x
topology: tpu7x:2x2x1
jax: 0.10.0
libtpu: 0.0.40
codegen_flags: <defaults>
</compile_context>

<pallas_src>
import functools

import jax
import jax.numpy as jnp
from jax.experimental import pallas as pl
from jax.experimental.pallas import tpu as pltpu

HIDDEN = 128
HEAD_WIDTH = 128  # lane-dense fused head output (col 0 = y, cols 1:3 = s, rest 0)


def _round_up(n, m):
    return ((n + m - 1) // m) * m


def _net_census_kernel(x_ref,
                       w1_ref, b1_ref,
                       w2_ref, b2_ref,
                       w3_ref, b3_ref,
                       w45_ref, b45_ref,
                       out_ref):
    # fc1 + relu   (dropout p=0.1 is identity in eval mode)
    x = x_ref[...]
    h = jnp.dot(x, w1_ref[...], preferred_element_type=jnp.float32) + b1_ref[...]
    h = jnp.maximum(h, 0.0)

    # fc2 + relu   (re-cast activations to the weight dtype so the MXU sees bf16 operands)
    h = jnp.dot(h.astype(w2_ref.dtype), w2_ref[...],
                preferred_element_type=jnp.float32) + b2_ref[...]
    h = jnp.maximum(h, 0.0)

    # fc3 + relu
    h = jnp.dot(h.astype(w3_ref.dtype), w3_ref[...],
                preferred_element_type=jnp.float32) + b3_ref[...]
    h = jnp.maximum(h, 0.0)

    # fused fc4/fc5 head -> single lane-dense [TB, 128] store.
    # TODO(synk): gradient reversal only affects the backward pass; forward is identity.
    out_ref[...] = jnp.dot(h.astype(w45_ref.dtype), w45_ref[...],
                           preferred_element_type=jnp.float32) + b45_ref[...]


@functools.partial(jax.jit, static_argnames=("block_rows", "use_bf16"))
def net_census_forward(x, params, *, block_rows=512, use_bf16=True):
    """x: [B, D] float32. params: dict of transposed weights/biases (see init_params)."""
    B, D = x.shape

    # --- tile size / padding -------------------------------------------------
    TB = _round_up(min(block_rows, _round_up(B, 8)), 8)
    Bp = _round_up(B, TB)
    if Bp != B:
        x = jnp.pad(x, ((0, Bp - B), (0, 0)))
    grid = (Bp // TB,)

    # --- fuse fc4 + fc5 into one lane-dense [128, 128] weight ---------------
    w45 = jnp.zeros((HIDDEN, HEAD_WIDTH), jnp.float32)
    w45 = w45.at[:, 0:1].set(params["w4"]).at[:, 1:3].set(params["w5"])
    b45 = jnp.zeros((1, HEAD_WIDTH), jnp.float32)
    b45 = b45.at[:, 0:1].set(params["b4"]).at[:, 1:3].set(params["b5"])

    # --- operand dtypes (bf16 matmul operands, f32 bias/accumulate) ---------
    op_dtype = jnp.bfloat16 if use_bf16 else jnp.float32
    xk = x.astype(op_dtype)
    w1 = params["w1"].astype(op_dtype)
    w2 = params["w2"].astype(op_dtype)
    w3 = params["w3"].astype(op_dtype)
    w45 = w45.astype(op_dtype)
    b1, b2, b3 = params["b1"], params["b2"], params["b3"]

    def resident(shape):  # weights/biases: same block every grid step -> VMEM-resident
        return pl.BlockSpec(shape, lambda i: (0, 0))

    out = pl.pallas_call(
        _net_census_kernel,
        out_shape=jax.ShapeDtypeStruct((Bp, HEAD_WIDTH), jnp.float32),
        grid=grid,
        in_specs=[
            pl.BlockSpec((TB, D), lambda i: (i, 0)),          # x: batch-tiled
            resident((D, HIDDEN)), resident((1, HIDDEN)),      # fc1
            resident((HIDDEN, HIDDEN)), resident((1, HIDDEN)), # fc2
            resident((HIDDEN, HIDDEN)), resident((1, HIDDEN)), # fc3
            resident((HIDDEN, HEAD_WIDTH)), resident((1, HEAD_WIDTH)),  # fused fc4/fc5
        ],
        out_specs=pl.BlockSpec((TB, HEAD_WIDTH), lambda i: (i, 0)),
        compiler_params=pltpu.CompilerParams(
            dimension_semantics=("parallel",)),
    )(xk, w1, b1, w2, b2, w3, b3, w45, b45)

    y = out[:B, 0:1]
    s = out[:B, 1:3]
    return y, s


def init_params(key, input_shape):
    """Deterministic synthetic init matching nn.Linear shapes (stored transposed: [in, out])."""
    ks = jax.random.split(key, 10)

    def linear(kw, kb, fan_in, fan_out):
        bound = 1.0 / jnp.sqrt(fan_in)
        w = jax.random.uniform(kw, (fan_in, fan_out), jnp.float32, -bound, bound)
        b = jax.random.uniform(kb, (1, fan_out), jnp.float32, -bound, bound)
        return w, b

    w1, b1 = linear(ks[0], ks[1], input_shape, HIDDEN)
    w2, b2 = linear(ks[2], ks[3], HIDDEN, HIDDEN)
    w3, b3 = linear(ks[4], ks[5], HIDDEN, HIDDEN)
    w4, b4 = linear(ks[6], ks[7], HIDDEN, 1)
    w5, b5 = linear(ks[8], ks[9], HIDDEN, 2)
    return dict(w1=w1, b1=b1, w2=w2, b2=b2, w3=w3, b3=b3,
                w4=w4, b4=b4, w5=w5, b5=b5)


def reference_forward(x, p, *, bf16_operands=False):
    """Pure-JAX reference. If bf16_operands, mimic the kernel's bf16 matmul operands."""
    def prep(a):
        return a.astype(jnp.bfloat16).astype(jnp.float32) if bf16_operands else a

    h = jnp.maximum(prep(x) @ prep(p["w1"]) + p["b1"], 0.0)
    h = jnp.maximum(prep(h) @ prep(p["w2"]) + p["b2"], 0.0)
    h = jnp.maximum(prep(h) @ prep(p["w3"]) + p["b3"], 0.0)
    y = prep(h) @ prep(p["w4"]) + p["b4"]
    s = prep(h) @ prep(p["w5"]) + p["b5"]
    return y, s


if __name__ == "__main__":
    key = jax.random.PRNGKey(0)
    k_x, k_p, k_x2 = jax.random.split(key, 3)

    D = 32  # census feature count (synthetic)
    params = init_params(k_p, D)

    # --- small batch: single grid step --------------------------------------
    B = 8
    x = jax.random.normal(k_x, (B, D), jnp.float32)
    y, s = net_census_forward(x, params)
    jax.block_until_ready((y, s))
    assert y.shape == (B, 1) and s.shape == (B, 2)

    # tight check against a reference using the same bf16 matmul operands
    y_ref, s_ref = reference_forward(x, params, bf16_operands=True)
    assert jnp.allclose(y, y_ref, atol=1e-3, rtol=1e-3)
    assert jnp.allclose(s, s_ref, atol=1e-3, rtol=1e-3)
    # loose check against the pure-f32 module semantics
    y_f32, s_f32 = reference_forward(x, params, bf16_operands=False)
    assert jnp.allclose(y, y_f32, atol=1e-1, rtol=1e-1)
    assert jnp.allclose(s, s_f32, atol=1e-1, rtol=1e-1)

    # --- larger, non-multiple batch: exercises the batch grid + padding -----
    B2 = 1000
    x2 = jax.random.normal(k_x2, (B2, D), jnp.float32)
    y2, s2 = net_census_forward(x2, params, block_rows=256)
    jax.block_until_ready((y2, s2))
    assert y2.shape == (B2, 1) and s2.shape == (B2, 2)
    y2_ref, s2_ref = reference_forward(x2, params, bf16_operands=True)
    assert jnp.allclose(y2, y2_ref, atol=1e-3, rtol=1e-3)
    assert jnp.allclose(s2, s2_ref, atol=1e-3, rtol=1e-3)

    print("KERNEL_OK")
</pallas_src>

<mosaic_0001>
module attributes {stable_mosaic.version = 11 : i64} {
  func.func @_net_census_kernel(%arg0: i32, %arg1: memref<8x32xbf16, #tpu.memory_space<vmem>>, %arg2: memref<32x128xbf16, #tpu.memory_space<vmem>>, %arg3: memref<1x128xf32, #tpu.memory_space<vmem>>, %arg4: memref<128x128xbf16, #tpu.memory_space<vmem>>, %arg5: memref<1x128xf32, #tpu.memory_space<vmem>>, %arg6: memref<128x128xbf16, #tpu.memory_space<vmem>>, %arg7: memref<1x128xf32, #tpu.memory_space<vmem>>, %arg8: memref<128x128xbf16, #tpu.memory_space<vmem>>, %arg9: memref<1x128xf32, #tpu.memory_space<vmem>>, %arg10: memref<8x128xf32, #tpu.memory_space<vmem>>) attributes {dimension_semantics = [#tpu.dimension_semantics<parallel>], iteration_bounds = array<i64: 1>, scalar_prefetch = 0 : i64, scratch_operands = 0 : i64, tpu.core_type = #tpu.core_type<tc>, window_params = [{transform_indices = @transform_0, window_bounds = array<i64: 8, 32>}, {pipeline_mode = #tpu.pipeline_mode<synchronous>, transform_indices = @transform_1, window_bounds = array<i64: 32, 128>}, {pipeline_mode = #tpu.pipeline_mode<synchronous>, transform_indices = @transform_2, window_bounds = array<i64: 1, 128>}, {pipeline_mode = #tpu.pipeline_mode<synchronous>, transform_indices = @transform_3, window_bounds = array<i64: 128, 128>}, {pipeline_mode = #tpu.pipeline_mode<synchronous>, transform_indices = @transform_4, window_bounds = array<i64: 1, 128>}, {pipeline_mode = #tpu.pipeline_mode<synchronous>, transform_indices = @transform_5, window_bounds = array<i64: 128, 128>}, {pipeline_mode = #tpu.pipeline_mode<synchronous>, transform_indices = @transform_6, window_bounds = array<i64: 1, 128>}, {pipeline_mode = #tpu.pipeline_mode<synchronous>, transform_indices = @transform_7, window_bounds = array<i64: 128, 128>}, {pipeline_mode = #tpu.pipeline_mode<synchronous>, transform_indices = @transform_8, window_bounds = array<i64: 1, 128>}, {transform_indices = @transform_9, window_bounds = array<i64: 8, 128>}]} {
    %c0 = arith.constant 0 : index
    %c0_0 = arith.constant 0 : index
    %0 = vector.load %arg1[%c0, %c0_0] : memref<8x32xbf16, #tpu.memory_space<vmem>>, vector<8x32xbf16>
    %c0_1 = arith.constant 0 : index
    %c0_2 = arith.constant 0 : index
    %1 = vector.load %arg2[%c0_1, %c0_2] : memref<32x128xbf16, #tpu.memory_space<vmem>>, vector<32x128xbf16>
    %cst = arith.constant dense<0.000000e+00> : vector<8x128xf32>
    %2 = tpu.matmul %0, %1, %cst {dimension_numbers = #tpu.dot_dimension_numbers<[1], [0], [0], [1], [0, 0, 1, 1], [], []>} : vector<8x32xbf16>, vector<32x128xbf16>, vector<8x128xf32> -> vector<8x128xf32>
    %c0_3 = arith.constant 0 : index
    %c0_4 = arith.constant 0 : index
    %3 = vector.load %arg3[%c0_3, %c0_4] : memref<1x128xf32, #tpu.memory_space<vmem>>, vector<1x128xf32>
    %4 = vector.broadcast %3 : vector<1x128xf32> to vector<8x128xf32>
    %5 = arith.addf %2, %4 : vector<8x128xf32>
    %cst_5 = arith.constant 0.000000e+00 : f32
    %6 = vector.broadcast %cst_5 : f32 to vector<8x128xf32>
    %7 = arith.maximumf %5, %6 : vector<8x128xf32>
    %8 = arith.truncf %7 : vector<8x128xf32> to vector<8x128xbf16>
    %c0_6 = arith.constant 0 : index
    %c0_7 = arith.constant 0 : index
    %9 = vector.load %arg4[%c0_6, %c0_7] : memref<128x128xbf16, #tpu.memory_space<vmem>>, vector<128x128xbf16>
    %cst_8 = arith.constant dense<0.000000e+00> : vector<8x128xf32>
    %10 = tpu.matmul %8, %9, %cst_8 {dimension_numbers = #tpu.dot_dimension_numbers<[1], [0], [0], [1], [0, 0, 1, 1], [], []>} : vector<8x128xbf16>, vector<128x128xbf16>, vector<8x128xf32> -> vector<8x128xf32>
    %c0_9 = arith.constant 0 : index
    %c0_10 = arith.constant 0 : index
    %11 = vector.load %arg5[%c0_9, %c0_10] : memref<1x128xf32, #tpu.memory_space<vmem>>, vector<1x128xf32>
    %12 = vector.broadcast %11 : vector<1x128xf32> to vector<8x128xf32>
    %13 = arith.addf %10, %12 : vector<8x128xf32>
    %cst_11 = arith.constant 0.000000e+00 : f32
    %14 = vector.broadcast %cst_11 : f32 to vector<8x128xf32>
    %15 = arith.maximumf %13, %14 : vector<8x128xf32>
    %16 = arith.truncf %15 : vector<8x128xf32> to vector<8x128xbf16>
    %c0_12 = arith.constant 0 : index
    %c0_13 = arith.constant 0 : index
    %17 = vector.load %arg6[%c0_12, %c0_13] : memref<128x128xbf16, #tpu.memory_space<vmem>>, vector<128x128xbf16>
    %cst_14 = arith.constant dense<0.000000e+00> : vector<8x128xf32>
    %18 = tpu.matmul %16, %17, %cst_14 {dimension_numbers = #tpu.dot_dimension_numbers<[1], [0], [0], [1], [0, 0, 1, 1], [], []>} : vector<8x128xbf16>, vector<128x128xbf16>, vector<8x128xf32> -> vector<8x128xf32>
    %c0_15 = arith.constant 0 : index
    %c0_16 = arith.constant 0 : index
    %19 = vector.load %arg7[%c0_15, %c0_16] : memref<1x128xf32, #tpu.memory_space<vmem>>, vector<1x128xf32>
    %20 = vector.broadcast %19 : vector<1x128xf32> to vector<8x128xf32>
    %21 = arith.addf %18, %20 : vector<8x128xf32>
    %cst_17 = arith.constant 0.000000e+00 : f32
    %22 = vector.broadcast %cst_17 : f32 to vector<8x128xf32>
    %23 = arith.maximumf %21, %22 : vector<8x128xf32>
    %24 = arith.truncf %23 : vector<8x128xf32> to vector<8x128xbf16>
    %c0_18 = arith.constant 0 : index
    %c0_19 = arith.constant 0 : index
    %25 = vector.load %arg8[%c0_18, %c0_19] : memref<128x128xbf16, #tpu.memory_space<vmem>>, vector<128x128xbf16>
    %cst_20 = arith.constant dense<0.000000e+00> : vector<8x128xf32>
    %26 = tpu.matmul %24, %25, %cst_20 {dimension_numbers = #tpu.dot_dimension_numbers<[1], [0], [0], [1], [0, 0, 1, 1], [], []>} : vector<8x128xbf16>, vector<128x128xbf16>, vector<8x128xf32> -> vector<8x128xf32>
    %c0_21 = arith.constant 0 : index
    %c0_22 = arith.constant 0 : index
    %27 = vector.load %arg9[%c0_21, %c0_22] : memref<1x128xf32, #tpu.memory_space<vmem>>, vector<1x128xf32>
    %28 = vector.broadcast %27 : vector<1x128xf32> to vector<8x128xf32>
    %29 = arith.addf %26, %28 : vector<8x128xf32>
    %c0_23 = arith.constant 0 : index
    %c0_24 = arith.constant 0 : index
    %30 = vector.load %arg10[%c0_23, %c0_24] : memref<8x128xf32, #tpu.memory_space<vmem>>, vector<8x128xf32>
    tpu.vector_store %arg10[%c0_23, %c0_24], %29 {strides = array<i32>} : memref<8x128xf32, #tpu.memory_space<vmem>>, vector<8x128xf32>,
    return
  }
  func.func @transform_0(%arg0: i32) -> (i32, i32) {
    %c0_i32 = arith.constant 0 : i32
    %c0_i32_0 = arith.constant 0 : i32
    return %arg0, %c0_i32 : i32, i32
  }
  func.func @transform_1(%arg0: i32) -> (i32, i32) {
    %c0_i32 = arith.constant 0 : i32
    %c0_i32_0 = arith.constant 0 : i32
    %c0_i32_1 = arith.constant 0 : i32
    return %c0_i32, %c0_i32_0 : i32, i32
  }
  func.func @transform_2(%arg0: i32) -> (i32, i32) {
    %c0_i32 = arith.constant 0 : i32
    %c0_i32_0 = arith.constant 0 : i32
    %c0_i32_1 = arith.constant 0 : i32
    return %c0_i32, %c0_i32_0 : i32, i32
  }
  func.func @transform_3(%arg0: i32) -> (i32, i32) {
    %c0_i32 = arith.constant 0 : i32
    %c0_i32_0 = arith.constant 0 : i32
    %c0_i32_1 = arith.constant 0 : i32
    return %c0_i32, %c0_i32_0 : i32, i32
  }
  func.func @transform_4(%arg0: i32) -> (i32, i32) {
    %c0_i32 = arith.constant 0 : i32
    %c0_i32_0 = arith.constant 0 : i32
    %c0_i32_1 = arith.constant 0 : i32
    return %c0_i32, %c0_i32_0 : i32, i32
  }
  func.func @transform_5(%arg0: i32) -> (i32, i32) {
    %c0_i32 = arith.constant 0 : i32
    %c0_i32_0 = arith.constant 0 : i32
    %c0_i32_1 = arith.constant 0 : i32
    return %c0_i32, %c0_i32_0 : i32, i32
  }
  func.func @transform_6(%arg0: i32) -> (i32, i32) {
    %c0_i32 = arith.constant 0 : i32
    %c0_i32_0 = arith.constant 0 : i32
    %c0_i32_1 = arith.constant 0 : i32
    return %c0_i32, %c0_i32_0 : i32, i32
  }
  func.func @transform_7(%arg0: i32) -> (i32, i32) {
    %c0_i32 = arith.constant 0 : i32
    %c0_i32_0 = arith.constant 0 : i32
    %c0_i32_1 = arith.constant 0 : i32
    return %c0_i32, %c0_i32_0 : i32, i32
  }
  func.func @transform_8(%arg0: i32) -> (i32, i32) {
    %c0_i32 = arith.constant 0 : i32
    %c0_i32_0 = arith.constant 0 : i32
    %c0_i32_1 = arith.constant 0 : i32
    return %c0_i32, %c0_i32_0 : i32, i32
  }
  func.func @transform_9(%arg0: i32) -> (i32, i32) {
    %c0_i32 = arith.constant 0 : i32
    %c0_i32_0 = arith.constant 0 : i32
    return %arg0, %c0_i32 : i32, i32
  }
}

</mosaic_0001>

<bundles_post_ra>
// kernel: net_census_forward.1
= control target key start
LH: loop header
LB: loop body
LE: loop exit
PB: predicated region body
PF: predicated region fallthrough
CT: control target
= control target key end

     0   :  { %v602_v0 = vmov 0.0   ;;  %vm603_vm0 = vmmov 0   ;;  %vm57_vm1 = vcmask 261120   ;;  %s784_s1 = inlined_call_operand.vmem [shape: bf16[32,128], index: 1, kind: input, shape index: {}]   ;;  %s785_s3 = inlined_call_operand.vmem [shape: bf16[128,128], index: 3, kind: input, shape index: {}]   ;;  %s786_s0 = inlined_call_operand.vmem [shape: bf16[8,32], index: 0, kind: input, shape index: {}]   ;;  %s787_s5 = inlined_call_operand.vmem [shape: bf16[128,128], index: 5, kind: input, shape index: {}]   ;;  %s788_s2 = inlined_call_operand.vmem [shape: f32[1,128], index: 2, kind: input, shape index: {}]   ;;  %s789_s7 = inlined_call_operand.vmem [shape: bf16[128,128], index: 7, kind: input, shape index: {}]   ;;  %s790_s4 = inlined_call_operand.vmem [shape: f32[1,128], index: 4, kind: input, shape index: {}]   ;;  %s791_s6 = inlined_call_operand.vmem [shape: f32[1,128], index: 6, kind: input, shape index: {}]   ;;  %s792_s8 = inlined_call_operand.vmem [shape: f32[1,128], index: 8, kind: input, shape index: {}]   ;;  %s793_s9 = inlined_call_operand.vmem [shape: f32[8,128], index: 9, kind: output, shape index: {}]  }
   0x1   :  { %506 = vmatprep.subr.bf16.mxu0 %v602_v0  ;;  %v576_v1 = vld [vmem:[%s784_s1] sm:$0xff]   ;;  %510 = vmatprep.mubr.msk.bf16.mxu0 %vm603_vm0, %v602_v0  ;;  %v577_v2 = vld [vmem:[%s784_s1 + $0x8] sm:$0xff]   ;;  %v580_v6 = vld [vmem:[%s785_s3 + $0x10] sm:$0xff]  }
   0x2   :  { %514 = vmatprep.subr.bf16.mxu1 %v602_v0  ;;  %530 = vmatprep.mubr.msk.bf16.mxu1 %vm603_vm0, %v602_v0  ;;  %v578_v3 = vld [vmem:[%s785_s3] sm:$0xff]   ;;  %v579_v4 = vld [vmem:[%s785_s3 + $0x8] sm:$0xff]   ;;  %v581_v7 = vld [vmem:[%s785_s3 + $0x18] sm:$0xff]  }
   0x3   :  { %507 = vmatpush3.bf16.msra.mxu0 %v576_v1  ;;  %515 = vmatpush3.bf16.msra.mxu1 %v578_v3  ;;  %v33_v5 = vld [vmem:[%s786_s0] sm:$0xf]  ;;  %v583_v9 = vld [vmem:[%s785_s3 + $0x28] sm:$0xff]   ;;  %v584_v10 = vld [vmem:[%s785_s3 + $0x30] sm:$0xff]  }
   0x4   :  { %508 = vmatprep.subr.bf16.mxu0 %v602_v0  ;;  %516 = vmatprep.subr.bf16.mxu1 %v602_v0  ;;  %v582_v8 = vld [vmem:[%s785_s3 + $0x20] sm:$0xff]   ;;  %v585_v11 = vld [vmem:[%s785_s3 + $0x38] sm:$0xff]   ;;  %v587_v13 = vld [vmem:[%s787_s5 + $0x8] sm:$0xff]  }
   0x5   :  { %v586_v12 = vld [vmem:[%s787_s5] sm:$0xff]   ;;  %v588_v14 = vld [vmem:[%s787_s5 + $0x10] sm:$0xff]   ;;  %v589_v15 = vld [vmem:[%s787_s5 + $0x18] sm:$0xff]  }
   0x6   :  { %v590_v16 = vld [vmem:[%s787_s5 + $0x20] sm:$0xff]   ;;  %v591_v17 = vld [vmem:[%s787_s5 + $0x28] sm:$0xff]   ;;  %v592_v26 = vld [vmem:[%s787_s5 + $0x30] sm:$0xff]  }
   0x7   :  { %509 = vmatpush3.bf16.msra.mxu0 %v577_v2  ;;  %517 = vmatpush3.bf16.msra.mxu1 %v579_v4  ;;  %v445_v18 = vld [vmem:[%s788_s2] ss:$0 sm:$0xff]  ;;  %v593_v27 = vld [vmem:[%s787_s5 + $0x38] sm:$0xff]   ;;  %v595_v29 = vld [vmem:[%s789_s7 + $0x8] sm:$0xff]  }
   0x8   :  { %534 = vmatprep.subr.bf16.mxu0 %v602_v0  ;;  %518 = vmatprep.subr.bf16.mxu1 %v602_v0  ;;  %v594_v28 = vld [vmem:[%s789_s7] sm:$0xff]   ;;  %v596_v30 = vld [vmem:[%s789_s7 + $0x10] sm:$0xff]   ;;  %v597_v31 = vld [vmem:[%s789_s7 + $0x18] sm:$0xff]  }
   0x9   :  { %v598_v32 = vld [vmem:[%s789_s7 + $0x20] sm:$0xff]   ;;  %v599_v33 = vld [vmem:[%s789_s7 + $0x28] sm:$0xff]   ;;  %v600_v42 = vld [vmem:[%s789_s7 + $0x30] sm:$0xff]  }
   0xa   :  { %511 = vmatmul.mubr.msk.bf16.vlgmr.msra.gmra.mrb[0].mxu0 %vm57_vm1, %v33_v5  ;;  %v449_v34 = vld [vmem:[%s790_s4] ss:$0 sm:$0xff]  ;;  %v601_v43 = vld [vmem:[%s789_s7 + $0x38] sm:$0xff]  }
   0xb   :  { %550 = vmatprep.mubr.msk.bf16.mxu0 %vm603_vm0, %v602_v0  ;;  %519 = vmatpush3.bf16.msra.mxu1 %v580_v6  ;;  %v458_v44 = vld [vmem:[%s791_s6] ss:$0 sm:$0xff] }
   0xc   :  { %520 = vmatprep.subr.bf16.mxu1 %v602_v0  ;;  %535 = vmatpush3.bf16.msra.mxu0 %v586_v12  ;;  %v467_v52 = vld [vmem:[%s792_s8] ss:$0 sm:$0xff] }
   0xd   :  { %536 = vmatprep.subr.bf16.mxu0 %v602_v0 }
   0xf   :  { %521 = vmatpush3.bf16.msra.mxu1 %v581_v7 }
  0x10   :  { %522 = vmatprep.subr.bf16.mxu1 %v602_v0  ;;  %537 = vmatpush3.bf16.msra.mxu0 %v587_v13 }
  0x11   :  { %538 = vmatprep.subr.bf16.mxu0 %v602_v0 }
  0x13   :  { %523 = vmatpush3.bf16.msra.mxu1 %v582_v8 }
  0x14   :  { %524 = vmatprep.subr.bf16.mxu1 %v602_v0  ;;  %539 = vmatpush3.bf16.msra.mxu0 %v588_v14 }
  0x15   :  { %540 = vmatprep.subr.bf16.mxu0 %v602_v0 }
  0x17   :  { %525 = vmatpush3.bf16.msra.mxu1 %v583_v9 }
  0x18   :  { %526 = vmatprep.subr.bf16.mxu1 %v602_v0  ;;  %541 = vmatpush3.bf16.msra.mxu0 %v589_v15 }
  0x19   :  { %542 = vmatprep.subr.bf16.mxu0 %v602_v0 }
  0x1b   :  { %527 = vmatpush3.bf16.msra.mxu1 %v584_v10 }
  0x1c   :  { %528 = vmatprep.subr.bf16.mxu1 %v602_v0  ;;  %543 = vmatpush3.bf16.msra.mxu0 %v590_v16 }
  0x1d   :  { %544 = vmatprep.subr.bf16.mxu0 %v602_v0 }
  0x1f   :  { %529 = vmatpush3.bf16.msra.mxu1 %v585_v11 }
  0x20   :  { %554 = vmatprep.subr.bf16.mxu1 %v602_v0  ;;  %545 = vmatpush3.bf16.msra.mxu0 %v591_v17 }
  0x21   :  { %546 = vmatprep.subr.bf16.mxu0 %v602_v0 }
  0x24   :  { %547 = vmatpush3.bf16.msra.mxu0 %v592_v26 }
  0x25   :  { %548 = vmatprep.subr.bf16.mxu0 %v602_v0 }
  0x28   :  { %549 = vmatpush3.bf16.msra.mxu0 %v593_v27 }
  0xdd   :  { %v95_v19 = vpop.f32.mrb[0].mxu0 }
  0xde   :  { %v96_v20 = vadd.f32 %v445_v18, %v95_v19  ;;  %v512_v21 = vpop.f32.mrb[1].mxu0 }
  0xdf   :  { %v98_v22 = vpop.f32.mrb[2].mxu0 }
  0xe0   :  { %v101_v23 = vmax.f32 %v96_v20, 0.0  ;;  %v513_v24 = vpop.f32.mrb[3].mxu0 }
  0xe2   :  { %v102_v25 = vpack.c.bf16 %v101_v23, %v101_v23 }
  0xe4   :  { %531 = vmatmul.mubr.bf16.vlgmr.msra.gmra.mrb[0].mxu1 %v102_v25 }
  0xe5   :  { %570 = vmatprep.mubr.msk.bf16.mxu1 %vm603_vm0, %v602_v0  ;;  %555 = vmatpush3.bf16.msra.mxu1 %v594_v28 }
  0xe6   :  { %556 = vmatprep.subr.bf16.mxu1 %v602_v0 }
  0xe9   :  { %557 = vmatpush3.bf16.msra.mxu1 %v595_v29 }
  0xea   :  { %558 = vmatprep.subr.bf16.mxu1 %v602_v0 }
  0xed   :  { %559 = vmatpush3.bf16.msra.mxu1 %v596_v30 }
  0xee   :  { %560 = vmatprep.subr.bf16.mxu1 %v602_v0 }
  0xf1   :  { %561 = vmatpush3.bf16.msra.mxu1 %v597_v31 }
  0xf2   :  { %562 = vmatprep.subr.bf16.mxu1 %v602_v0 }
  0xf5   :  { %563 = vmatpush3.bf16.msra.mxu1 %v598_v32 }
  0xf6   :  { %564 = vmatprep.subr.bf16.mxu1 %v602_v0 }
  0xf9   :  { %565 = vmatpush3.bf16.msra.mxu1 %v599_v33 }
  0xfa   :  { %566 = vmatprep.subr.bf16.mxu1 %v602_v0 }
  0xfd   :  { %567 = vmatpush3.bf16.msra.mxu1 %v600_v42 }
  0xfe   :  { %568 = vmatprep.subr.bf16.mxu1 %v602_v0 }
 0x101   :  { %569 = vmatpush3.bf16.msra.mxu1 %v601_v43 }
 0x1b7   :  { %v208_v35 = vpop.f32.mrb[0].mxu1 }
 0x1b8   :  { %v209_v36 = vadd.f32 %v449_v34, %v208_v35  ;;  %v532_v37 = vpop.f32.mrb[1].mxu1 }
 0x1b9   :  { %v211_v38 = vpop.f32.mrb[2].mxu1 }
 0x1ba   :  { %v214_v39 = vmax.f32 %v209_v36, 0.0  ;;  %v533_v40 = vpop.f32.mrb[3].mxu1 }
 0x1bc   :  { %v215_v41 = vpack.c.bf16 %v214_v39, %v214_v39 }
 0x1be   :  { %551 = vmatmul.mubr.bf16.vlgmr.msra.gmra.mrb[4].mxu0 %v215_v41 }
 0x291   :  { %v321_v45 = vpop.f32.mrb[4].mxu0 }
 0x292   :  { %v322_v46 = vadd.f32 %v458_v44, %v321_v45  ;;  %v552_v47 = vpop.f32.mrb[5].mxu0 }
 0x293   :  { %v324_v48 = vpop.f32.mrb[6].mxu0 }
 0x294   :  { %v327_v49 = vmax.f32 %v322_v46, 0.0  ;;  %v553_v50 = vpop.f32.mrb[7].mxu0 }
 0x296   :  { %v328_v51 = vpack.c.bf16 %v327_v49, %v327_v49 }
 0x298   :  { %571 = vmatmul.mubr.bf16.vlgmr.msra.gmra.mrb[4].mxu1 %v328_v51 }
 0x36b   :  { %v434_v53 = vpop.f32.mrb[4].mxu1 }
 0x36c   :  { %v435_v54 = vadd.f32 %v467_v52, %v434_v53  ;;  %v572_v55 = vpop.f32.mrb[5].mxu1 }
 0x36d   :  { %v437_v56 = vpop.f32.mrb[6].mxu1 }
 0x36e   :  { %440 = vst [vmem:[%s793_s9] sm:$0xff] %v435_v54  ;;  %v573_v57 = vpop.f32.mrb[7].mxu1 }

</bundles_post_ra>
